<compile_context>
chip_gen: v5e
topology: v5e:2x2
jax: 0.10.0
libtpu: 0.0.40
codegen_flags: <defaults>
</compile_context>

<pallas_src>
import functools

import jax
import jax.numpy as jnp
from jax.experimental import pallas as pl
from jax.experimental.pallas import tpu as pltpu


# --------------------------------------------------------------------------
# Kernels
# --------------------------------------------------------------------------
def _distill_kl_rows_kernel(ys_ref, yt_ref, kl_ref, *, inv_T: float):
    """Whole class axis in one block: per-row KL in a single pass."""
    a = ys_ref[...].astype(jnp.float32) * inv_T   # student logits / T
    b = yt_ref[...].astype(jnp.float32) * inv_T   # teacher logits / T

    a_sh = a - jnp.max(a, axis=1, keepdims=True)
    b_sh = b - jnp.max(b, axis=1, keepdims=True)

    za = jnp.sum(jnp.exp(a_sh), axis=1, keepdims=True)
    eb = jnp.exp(b_sh)
    zb = jnp.sum(eb, axis=1, keepdims=True)

    # kl_row = sum_c p_t*(log p_t - log p_s)
    #        = sum_c(eb*(b_sh - a_sh))/zb + log(za/zb)      (since sum p_t = 1)
    w = jnp.sum(eb * (b_sh - a_sh), axis=1, keepdims=True)
    kl_ref[...] = w / zb + jnp.log(za / zb)


def _distill_kl_flash_kernel(ys_ref, yt_ref, kl_ref,
                             ms_ref, zs_ref, mt_ref, zt_ref, w_ref,
                             *, inv_T: float, C: int, TC: int):
    """Class-tiled (online-softmax) path for large C.

    Running per-row state (VMEM scratch, (TB,1) each):
      ms, zs : max / exp-sum of student logits
      mt, zt : max / exp-sum of teacher logits
      w      : sum_c exp(b_c - mt) * (b_c - a_c)
    Final:  kl_row = w/zt + (ms - mt) + log(zs/zt)
    """
    j = pl.program_id(1)

    @pl.when(j == 0)
    def _init():
        ms_ref[...] = jnp.full_like(ms_ref, -jnp.inf)
        mt_ref[...] = jnp.full_like(mt_ref, -jnp.inf)
        zs_ref[...] = jnp.zeros_like(zs_ref)
        zt_ref[...] = jnp.zeros_like(zt_ref)
        w_ref[...] = jnp.zeros_like(w_ref)

    a = ys_ref[...].astype(jnp.float32) * inv_T
    b = yt_ref[...].astype(jnp.float32) * inv_T

    if C % TC != 0:
        # Mask class-padding columns of the ragged last tile: exp underflows
        # to 0, (b - a) stays finite, so padded columns contribute nothing.
        col = j * TC + jax.lax.broadcasted_iota(jnp.int32, a.shape, 1)
        valid = col < C
        neg = jnp.float32(-1e30)
        a = jnp.where(valid, a, neg)
        b = jnp.where(valid, b, neg)

    ms_new = jnp.maximum(ms_ref[...], jnp.max(a, axis=1, keepdims=True))
    mt_new = jnp.maximum(mt_ref[...], jnp.max(b, axis=1, keepdims=True))
    alpha_s = jnp.exp(ms_ref[...] - ms_new)   # exp(-inf)=0 on the first step
    alpha_t = jnp.exp(mt_ref[...] - mt_new)

    ea = jnp.exp(a - ms_new)
    eb = jnp.exp(b - mt_new)

    zs_ref[...] = alpha_s * zs_ref[...] + jnp.sum(ea, axis=1, keepdims=True)
    zt_ref[...] = alpha_t * zt_ref[...] + jnp.sum(eb, axis=1, keepdims=True)
    w_ref[...] = alpha_t * w_ref[...] + jnp.sum(eb * (b - a), axis=1, keepdims=True)
    ms_ref[...] = ms_new
    mt_ref[...] = mt_new

    @pl.when(j == pl.num_programs(1) - 1)
    def _finalize():
        zs = zs_ref[...]
        zt = zt_ref[...]
        kl_ref[...] = (w_ref[...] / zt
                       + (ms_ref[...] - mt_ref[...])
                       + jnp.log(zs / zt))


# --------------------------------------------------------------------------
# Tiling plan / VMEM budgeting
# --------------------------------------------------------------------------
def _round_up(x: int, m: int) -> int:
    return ((x + m - 1) // m) * m


def _fit_tb(tb: int, B: int) -> int:
    """Clamp a batch-tile request to the sublane rule (multiple of 8 or == B)."""
    tb = int(tb)
    if tb >= B or B <= 8:
        return B
    return max(8, (tb // 8) * 8)


def _vmem_ceiling_bytes() -> int:
    """Scoped-VMEM ceiling used for tile budgeting.

    Conservative default fits v7x (64 MiB physical, 32 MiB scoped default);
    128 MiB-VMEM parts (v5e/v6e) are allowed up to 64 MiB for bigger tiles.
    """
    try:
        cap = getattr(pltpu.get_tpu_info(), "vmem_capacity_bytes", None)
        if cap:
            return int(min(cap // 2, 64 * 1024 * 1024))
    except Exception:
        pass
    return 28 * 1024 * 1024


def _block_budget_bytes(ceiling: int) -> int:
    """Bytes per input block: 2 inputs x 2 pipeline buffers must fit under
    the ceiling with headroom for output blocks / scratch / compiler temps."""
    budget = (ceiling - 6 * 1024 * 1024) // 4
    return int(max(512 * 1024, min(budget, 14 * 1024 * 1024)))


def _plan_tiles(B, C, itemsize, block_budget, tile_batch=None, tile_classes=None):
    """Pick (TB, TC). TC == C -> row kernel; TC < C -> class-tiled kernel."""
    # ---- class tile ----
    if tile_classes is not None:
        tc = int(tile_classes)
        TC = C if tc >= C else max(128, (tc // 128) * 128)
    else:
        rows_with_full_c = block_budget // max(1, C * itemsize)
        TC = C if rows_with_full_c >= min(8, B) else 0   # 0 -> decide below

    if TC == C:
        # Typical distillation (C ~ 1e2..1e3): one block spans the class axis.
        if tile_batch is not None:
            TB = _fit_tb(tile_batch, B)
        else:
            TB = block_budget // max(1, C * itemsize)
            if B > 16:
                # Keep >= ~4 grid steps: v7x megacore split + DMA/compute overlap.
                TB = min(TB, _round_up(pl.cdiv(B, 4), 8))
            TB = _fit_tb(TB, B)
        return TB, C

    # Large class axis: flash-softmax accumulation over C tiles.
    if tile_batch is not None:
        TB = _fit_tb(tile_batch, B)
    else:
        TB = min(B, 256)
        if B > 16:
            # >= 2 batch tiles so v7x's second TensorCore gets work.
            TB = min(TB, _round_up(pl.cdiv(B, 2), 8))
        TB = _fit_tb(TB, B)
    if TC == 0:
        TC = (block_budget // max(1, TB * itemsize)) // 128 * 128
        TC = max(128, TC)
    if TC >= C:
        TC = C
    return TB, TC


# --------------------------------------------------------------------------
# Wrapper
# --------------------------------------------------------------------------
def _reference_distill_kl(y_s, y_t, T):
    """Pure-JAX reference mirroring the PyTorch module (f32 compute)."""
    y_s = y_s.astype(jnp.float32)
    y_t = y_t.astype(jnp.float32)
    log_p_s = jax.nn.log_softmax(y_s / T, axis=1)
    log_p_t = jax.nn.log_softmax(y_t / T, axis=1)
    p_t = jnp.exp(log_p_t)
    kl = jnp.sum(p_t * (log_p_t - log_p_s)) / y_s.shape[0]
    return kl * (float(T) ** 2)


def distill_kl(y_s: jax.Array, y_t: jax.Array, T: float, *,
               tile_batch=None, tile_classes=None, use_pallas=None) -> jax.Array:
    """Pallas implementation of DistillKL.forward(y_s, y_t)."""
    assert y_s.shape == y_t.shape and y_s.ndim == 2
    B, C = y_s.shape
    itemsize = jnp.dtype(y_s.dtype).itemsize

    if use_pallas is None:
        # Tiny logits: the fused XLA reference beats any kernel launch.
        use_pallas = (2 * B * C * itemsize) >= (1 << 20)
    if not use_pallas:
        return _reference_distill_kl(y_s, y_t, T)

    ceiling = _vmem_ceiling_bytes()
    block_budget = _block_budget_bytes(ceiling)
    TB, TC = _plan_tiles(B, C, itemsize, block_budget, tile_batch, tile_classes)

    # VMEM limit from the actual pipelined footprint + headroom
    # (inputs double-buffered; (TB,1) blocks are lane-padded to 128 in VMEM).
    footprint = 2 * 2 * TB * TC * itemsize + 2 * TB * 128 * 4
    if TC != C:
        footprint += 5 * TB * 128 * 4          # online-softmax scratch
    vmem_limit = int(max(16 * 1024 * 1024, footprint + 4 * 1024 * 1024))

    inv_T = 1.0 / float(T)

    if TC == C:
        kernel = functools.partial(_distill_kl_rows_kernel, inv_T=inv_T)
        row_kl = pl.pallas_call(
            kernel,
            out_shape=jax.ShapeDtypeStruct((B, 1), jnp.float32),
            grid=(pl.cdiv(B, TB),),
            in_specs=[
                pl.BlockSpec((TB, C), lambda i: (i, 0)),
                pl.BlockSpec((TB, C), lambda i: (i, 0)),
            ],
            out_specs=pl.BlockSpec((TB, 1), lambda i: (i, 0)),
            compiler_params=pltpu.CompilerParams(
                dimension_semantics=("parallel",),
                vmem_limit_bytes=vmem_limit,
            ),
        )(y_s, y_t)
    else:
        kernel = functools.partial(_distill_kl_flash_kernel,
                                   inv_T=inv_T, C=C, TC=TC)
        row_kl = pl.pallas_call(
            kernel,
            out_shape=jax.ShapeDtypeStruct((B, 1), jnp.float32),
            grid=(pl.cdiv(B, TB), pl.cdiv(C, TC)),
            in_specs=[
                pl.BlockSpec((TB, TC), lambda i, j: (i, j)),
                pl.BlockSpec((TB, TC), lambda i, j: (i, j)),
            ],
            out_specs=pl.BlockSpec((TB, 1), lambda i, j: (i, 0)),
            scratch_shapes=[pltpu.VMEM((TB, 1), jnp.float32)] * 5,
            compiler_params=pltpu.CompilerParams(
                dimension_semantics=("parallel", "arbitrary"),
                vmem_limit_bytes=vmem_limit,
            ),
        )(y_s, y_t)

    # batchmean + temperature scaling (tiny reduction, fused by XLA outside).
    return jnp.sum(row_kl) * (float(T) * float(T) / B)


# --------------------------------------------------------------------------
# Self-test
# --------------------------------------------------------------------------
if __name__ == "__main__":
    T = 4.0
    key = jax.random.PRNGKey(0)
    k1, k2, k3, k4, k5, k6 = jax.random.split(key, 6)

    # Case 1: typical small logits, row kernel, auto tiling (4 batch tiles).
    y_s = jax.random.normal(k1, (32, 128), dtype=jnp.float32)
    y_t = jax.random.normal(k2, (32, 128), dtype=jnp.float32)
    ref = _reference_distill_kl(y_s, y_t, T)
    out = distill_kl(y_s, y_t, T, use_pallas=True)
    jax.block_until_ready(out)
    assert jnp.allclose(out, ref, rtol=1e-4, atol=1e-4), (out, ref)

    # Auto dispatch: this tiny problem falls back to the fused XLA reference.
    out_auto = distill_kl(y_s, y_t, T)
    jax.block_until_ready(out_auto)
    assert jnp.allclose(out_auto, ref, rtol=1e-4, atol=1e-4), (out_auto, ref)

    # Case 2: ragged batch tile (B=20, TB=8) through the row kernel.
    y_s2 = jax.random.normal(k3, (20, 160), dtype=jnp.float32)
    y_t2 = jax.random.normal(k4, (20, 160), dtype=jnp.float32)
    ref2 = _reference_distill_kl(y_s2, y_t2, T)
    out2 = distill_kl(y_s2, y_t2, T, use_pallas=True, tile_batch=8)
    jax.block_until_ready(out2)
    assert jnp.allclose(out2, ref2, rtol=1e-4, atol=1e-4), (out2, ref2)

    # Case 3: class-tiled (online-softmax) path, ragged class tile, bf16 in.
    y_s3 = jax.random.normal(k5, (24, 300), dtype=jnp.float32).astype(jnp.bfloat16)
    y_t3 = jax.random.normal(k6, (24, 300), dtype=jnp.float32).astype(jnp.bfloat16)
    ref3 = _reference_distill_kl(y_s3, y_t3, T)
    out3 = distill_kl(y_s3, y_t3, T, use_pallas=True, tile_batch=16, tile_classes=128)
    jax.block_until_ready(out3)
    assert jnp.allclose(out3, ref3, rtol=1e-3, atol=1e-3), (out3, ref3)

    print("KERNEL_OK")
</pallas_src>

<mosaic_0001>
module attributes {stable_mosaic.version = 11 : i64} {
  func.func @_distill_kl_rows_kernel(%arg0: i32, %arg1: memref<8x128xf32, #tpu.memory_space<vmem>>, %arg2: memref<8x128xf32, #tpu.memory_space<vmem>>, %arg3: memref<8x1xf32, #tpu.memory_space<vmem>>) attributes {dimension_semantics = [#tpu.dimension_semantics<parallel>], iteration_bounds = array<i64: 4>, scalar_prefetch = 0 : i64, scratch_operands = 0 : i64, tpu.core_type = #tpu.core_type<tc>, window_params = [{transform_indices = @transform_0, window_bounds = array<i64: 8, 128>}, {transform_indices = @transform_1, window_bounds = array<i64: 8, 128>}, {transform_indices = @transform_2, window_bounds = array<i64: 8, 1>}]} {
    %c0 = arith.constant 0 : index
    %c0_0 = arith.constant 0 : index
    %0 = vector.load %arg1[%c0, %c0_0] : memref<8x128xf32, #tpu.memory_space<vmem>>, vector<8x128xf32>
    %cst = arith.constant 2.500000e-01 : f32
    %1 = vector.broadcast %cst : f32 to vector<8x128xf32>
    %2 = arith.mulf %0, %1 : vector<8x128xf32>
    %c0_1 = arith.constant 0 : index
    %c0_2 = arith.constant 0 : index
    %3 = vector.load %arg2[%c0_1, %c0_2] : memref<8x128xf32, #tpu.memory_space<vmem>>, vector<8x128xf32>
    %cst_3 = arith.constant 2.500000e-01 : f32
    %4 = vector.broadcast %cst_3 : f32 to vector<8x128xf32>
    %5 = arith.mulf %3, %4 : vector<8x128xf32>
    %cst_4 = arith.constant dense<0xFF800000> : vector<8xf32>
    %6 = vector.multi_reduction <maximumf>, %2, %cst_4 [1] : vector<8x128xf32> to vector<8xf32>
    %7 = vector.shape_cast %6 : vector<8xf32> to vector<8x1xf32>
    %8 = vector.broadcast %7 : vector<8x1xf32> to vector<8x128xf32>
    %9 = arith.subf %2, %8 : vector<8x128xf32>
    %cst_5 = arith.constant dense<0xFF800000> : vector<8xf32>
    %10 = vector.multi_reduction <maximumf>, %5, %cst_5 [1] : vector<8x128xf32> to vector<8xf32>
    %11 = vector.shape_cast %10 : vector<8xf32> to vector<8x1xf32>
    %12 = vector.broadcast %11 : vector<8x1xf32> to vector<8x128xf32>
    %13 = arith.subf %5, %12 : vector<8x128xf32>
    %14 = math.exp %9 : vector<8x128xf32>
    %cst_6 = arith.constant dense<0.000000e+00> : vector<8xf32>
    %15 = vector.multi_reduction <add>, %14, %cst_6 [1] : vector<8x128xf32> to vector<8xf32>
    %16 = vector.shape_cast %15 : vector<8xf32> to vector<8x1xf32>
    %17 = math.exp %13 : vector<8x128xf32>
    %cst_7 = arith.constant dense<0.000000e+00> : vector<8xf32>
    %18 = vector.multi_reduction <add>, %17, %cst_7 [1] : vector<8x128xf32> to vector<8xf32>
    %19 = vector.shape_cast %18 : vector<8xf32> to vector<8x1xf32>
    %20 = arith.subf %13, %9 : vector<8x128xf32>
    %21 = arith.mulf %17, %20 : vector<8x128xf32>
    %cst_8 = arith.constant dense<0.000000e+00> : vector<8xf32>
    %22 = vector.multi_reduction <add>, %21, %cst_8 [1] : vector<8x128xf32> to vector<8xf32>
    %23 = vector.shape_cast %22 : vector<8xf32> to vector<8x1xf32>
    %24 = arith.divf %23, %19 : vector<8x1xf32>
    %25 = arith.divf %16, %19 : vector<8x1xf32>
    %26 = math.log %25 : vector<8x1xf32>
    %27 = arith.addf %24, %26 : vector<8x1xf32>
    %c0_9 = arith.constant 0 : index
    %c0_10 = arith.constant 0 : index
    %28 = vector.load %arg3[%c0_9, %c0_10] : memref<8x1xf32, #tpu.memory_space<vmem>>, vector<8x1xf32>
    tpu.vector_store %arg3[%c0_9, %c0_10], %27 {strides = array<i32>} : memref<8x1xf32, #tpu.memory_space<vmem>>, vector<8x1xf32>,
    return
  }
  func.func @transform_0(%arg0: i32) -> (i32, i32) {
    %c0_i32 = arith.constant 0 : i32
    %c0_i32_0 = arith.constant 0 : i32
    return %arg0, %c0_i32 : i32, i32
  }
  func.func @transform_1(%arg0: i32) -> (i32, i32) {
    %c0_i32 = arith.constant 0 : i32
    %c0_i32_0 = arith.constant 0 : i32
    return %arg0, %c0_i32 : i32, i32
  }
  func.func @transform_2(%arg0: i32) -> (i32, i32) {
    %c0_i32 = arith.constant 0 : i32
    %c0_i32_0 = arith.constant 0 : i32
    return %arg0, %c0_i32 : i32, i32
  }
}

</mosaic_0001>

<bundles_post_ra>
// kernel: tpu_custom_call.1
= control target key start
LH: loop header
LB: loop body
LE: loop exit
PB: predicated region body
PF: predicated region fallthrough
CT: control target
= control target key end

     0   :  { %7 = vsyncpa [#allocation3], 0  ;;  %s637_s0 = inlined_call_operand.hbm [shape: f32[32,128], index: 0, kind: input, shape index: {}]   ;;  %s638_s1 = inlined_call_operand.hbm [shape: f32[32,128], index: 1, kind: input, shape index: {}]   ;;  %s639_s2 = inlined_call_operand.vmem [shape: f32[32,1], index: 2, kind: output, shape index: {}]  }
   0x1   :  { %9 = vsyncpa [#allocation3 + $0x1], 0 }
   0x2   :  { %10 = vsyncpa [#allocation5], 0 }
   0x3   :  { %12 = vsyncpa [#allocation5 + $0x1], 0  ;;  %s511_s9 = smov 0   ;;  %s513_s10 = smov 0  }
   0x4   :  { %s515_s11 = smov 0   ;;  %s517_s12 = smov 0  }
   0x5 LB: > { %s530_s13 = sadd.s32 4294967295, %s494_s12   ;;  %s533_s14 = sadd.s32 1, %s494_s12   ;;  %s494_s12 = sphi %s517_s12, %s647_s12   ;;  %s490_s11 = sphi %s515_s11, %s646_s11   ;;  %s486_s10 = sphi %s513_s10, %s645_s10   ;;  %s482_s9 = sphi %s511_s9, %s644_s9  }
   0x6   : > { %s22_s15 = ssub.s32 %s494_s12, %s533_s14  ;;  %s25_s16 = sadd.s32 1, %s490_s11 }
   0x7   : > { %p23_p0 = scmp.eq.s32.totalorder %s22_s15, 0  ;;  %p32_p1 = scmp.ne.s32.totalorder %s490_s11, %s486_s10 }
   0x8   : > { %p33_p2 = scmp.eq.s32.totalorder %s494_s12, 0  ;;  %p38_p3 = scmp.ne.s32.totalorder %s486_s10, %s482_s9 }
   0x9   : > { %s543_s17 = scalar_select %p23_p0, %s490_s11, %s25_s16  }
   0xa   : > { %p545_p4 = por %p33_p2, %p32_p1  ;;  %p39_p5 = scmp.eq.s32.totalorder %s530_s13, 0 }
   0xb   : > { %p355_p6 = scmp.lt.s32.totalorder %s494_s12, 4  ;;  %s556_s20 = sand.u32 1, %s490_s11  }
   0xc   : > { %p551_p7 = por %p39_p5, %p38_p3  ;;  %s334_s21 = sshll.u32 %s556_s20, 3 }
   0xd   : > { %s335_s22 = sshll.u32 %s494_s12, 3  ;;  %s118_s26 = scalar_lea.vmem [#allocation2], %s334_s21 }
   0xe   : > { %s122_s25 = scalar_lea.hbm %s637_s0, %s335_s22  ;;  %s126_s27 = sshll.u32 %s118_s26, 4  ;;  %s127_s27 = int_to_ptr.vmem [resolvable:$true] %s126_s27 }
   0xf   : > { %s124_s28 = sshll.u32 %s122_s25, 4  ;;  %p565_p8 = pnand %p355_p6, %p545_p4  ;;  %s125_s28 = int_to_ptr.hbm [resolvable:$true] %s124_s28 }
  0x10   : > { %p338_p9 = scmp.ge.s32.totalorder %s494_s12, 1  ;;  %p150_p10 = scmp.lt.s32.totalorder %s494_s12, 5 }
  0x11   : > { %s115_s30 = scalar_lea.sflag [#allocation3], %s556_s20  ;;  %s396_s3 = sshra.s32 %s125_s28, 4  ;;  %s397_s3 = int_to_ptr.hbm [resolvable:$true] %s396_s3 }
  0x12   : > { %s398_s4 = scalar_lea.hbm %s397_s3, 8  ;;  %p400_p12 = pneg %p565_p8 }
  0x13   : > { %p399_p11 = scmp.ne.s32.totalorder %s397_s3, %s398_s4  ;;  %s403_s7 = scalar_lea.hbm %s637_s0, 32 }
  0x14   : > { %p404_p1 = scmp.lt.s32.totalorder %s397_s3, %s637_s0  ;;  %p405_p2 = scmp.lt.s32.totalorder %s403_s7, %s398_s4 }
  0x15   : > { %p401_p13 = pnand %p400_p12, %p399_p11 }
  0x16   : > { %p406_p3 = por %p405_p2, %p404_p1 }
  0x17   : > { %p402_p0 = pneg %p401_p13 }
  0x19   : > { %p407_p4 = pnand %p406_p3, %p402_p0 }
  0x1b   : > { %410 = shalt.err (!%p407_p4)
}
  0x1c   : > { %351 = dma.hbm_to_vmem [thread:$0]  (!%p565_p8), %s125_s28, 128, %s127_s27, %s115_s30  }
  0x1d   : > { %p589_p5 = pnand %p338_p9, %p150_p10  ;;  %s141_s23 = scalar_lea.hbm %s638_s1, %s335_s22 }
  0x1e   : > { %s137_s24 = scalar_lea.vmem [#allocation4], %s334_s21  ;;  %s143_s26 = sshll.u32 %s141_s23, 4  ;;  %s144_s26 = int_to_ptr.hbm [resolvable:$true] %s143_s26 }
  0x1f   : > { %s145_s25 = sshll.u32 %s137_s24, 4  ;;  %s134_s3 = scalar_lea.sflag [#allocation5], %s556_s20  ;;  %s146_s25 = int_to_ptr.vmem [resolvable:$true] %s145_s25 }
  0x20   : > { %s426_s4 = sshra.s32 %s144_s26, 4  ;;  %s433_s28 = scalar_lea.hbm %s638_s1, 32  ;;  %s427_s4 = int_to_ptr.hbm [resolvable:$true] %s426_s4 }
  0x21   : > { %s428_s5 = scalar_lea.hbm %s427_s4, 8  ;;  %p434_p11 = scmp.lt.s32.totalorder %s427_s4, %s638_s1 }
  0x22   : > { %p429_p6 = scmp.ne.s32.totalorder %s427_s4, %s428_s5  ;;  %p435_p13 = scmp.lt.s32.totalorder %s433_s28, %s428_s5 }
  0x24   : > { %p431_p9 = pnand %p429_p6, %p400_p12  ;;  %p436_p0 = por %p435_p13, %p434_p11 }
  0x26   : > { %p432_p10 = pneg %p431_p9 }
  0x28   : > { %p437_p1 = pnand %p436_p0, %p432_p10 }
  0x2a   : > { %440 = shalt.err (!%p437_p1)
}
  0x2b   : > { %354 = dma.hbm_to_vmem [thread:$0]  (!%p565_p8), %s144_s26, 128, %s146_s25, %s134_s3  }
  0x2c   : > { %154 = sbr.rel (%p589_p5) target bundleno = 329 (0x149), region = 28  ;;  %s156_s20 = sand.u32 (!%p589_p5), 1, %s486_s10  }
  0x2d   : > { %s339_s21 = sshll.u32 (!%p589_p5), %s156_s20, 3  ;;  %s157_s6 = scalar_lea.sflag (!%p589_p5), [#allocation3], %s156_s20 }
  0x2e   : > { %s160_s7 = scalar_lea.vmem (!%p589_p5), [#allocation2], %s339_s21 }
  0x31   : > { %473 = dma.done.wait (%p551_p7), %s157_s6, 128  }
  0x32   : > { %475 = vsyncadd (%p551_p7), %s157_s6, 4294967168  ;;  %s167_s8 = scalar_lea.sflag [#allocation5], %s156_s20  ;;  %s170_s9 = scalar_lea.vmem [#allocation4], %s339_s21 }
  0x33   : > { %477 = dma.done.wait (%p551_p7), %s167_s8, 128  }
  0x34   : > { %479 = vsyncadd (%p551_p7), %s167_s8, 4294967168  ;;  %v202_v0 = vld [vmem:[%s170_s9] sm:$0xff]  ;;  %v200_v2 = vld [vmem:[%s160_s7] sm:$0xff]  ;;  %p196_p7 = scmp.lt.s32.totalorder %s530_s13, 3  ;;  %vm241_vm4 = vcmask 7168  }
  0x35   : > { %v203_v1 = vmul.f32 0.25, %v202_v0  ;;  %v201_v3 = vmul.f32 0.25, %v200_v2 }
  0x36   : > { %s649_s13 = smov (!%p196_p7, %s530_s13), 3 }
  0x37   : > { %207 = vmax.xlane.f32.xlu0 %v203_v1  ;;  %s341_s19 = sshll.u32 %s649_s13, 3 }
  0x38   : > { %s199_s16 = scalar_lea.vmem %s639_s2, %s341_s19 }
  0x3f   : > { %204 = vmax.xlane.f32.xlu0 %v201_v3 }
  0xaa   : > { %v208_v4 = vpop.xlane.xlu0 %207 }
  0xab   : > { %v209_v5 = vsub.f32 %v203_v1, %v208_v4 }
  0xad   : > { %v214_v6 = vmul.f32 1.442695, %v209_v5 }
  0xaf   : > { %388 = vpow2.f32 %v214_v6 }
  0xb2   : > { %v205_v7 = vpop.xlane.xlu0 %204 }
  0xb3   : > { %v206_v8 = vsub.f32 %v201_v3, %v205_v7 }
  0xb5   : > { %v389_v9 = vpop.eup %388  ;;  %v210_v10 = vmul.f32 1.442695, %v206_v8  ;;  %v218_v11 = vsub.f32 %v209_v5, %v206_v8 }
  0xb6   : > { %216 = vadd.xlane.f32.xlu1 %v389_v9 }
  0xb7   : > { %390 = vpow2.f32 %v210_v10  ;;  %v219_v12 = vmul.f32 %v389_v9, %v218_v11 }
  0xb9   : > { %220 = vadd.xlane.f32.xlu2 %v219_v12 }
  0xbd   : > { %v391_v13 = vpop.eup %390 }
  0xbe   : > { %212 = vadd.xlane.f32.xlu1 %v391_v13 }
 0x129   : > { %v217_v14 = vpop.xlane.xlu1 %216 }
 0x12a   : > { %392 = vrcp.f32 %v217_v14  ;;  %v233_v18 = vand.u32 2147483648, %v217_v14  ;;  %v231_v20 = vand.u32 2147483647, %v217_v14  ;;  %vm227_vm1 = vweird.f32 %v217_v14 }
 0x12c   : > { %v234_v22 = vor.u32 1.1754944e-38, %v233_v18  ;;  %vm232_vm3 = vcmp.eq.f32.partialorder %v231_v20, 8.507059e+37  ;;  %v221_v28 = vpop.xlane.xlu2 %220 }
 0x130   : > { %v393_v15 = vpop.eup %392 }
 0x131   : > { %v223_v16 = vmul.f32 %v393_v15, %v217_v14  ;;  %vm228_vm0 = vweird.f32 %v393_v15  ;;  %v213_v23 = vpop.xlane.xlu1 %212 }
 0x132   : > { %vm229_vm2 = vmor %vm227_vm1, %vm228_vm0 }
 0x133   : > { %v224_v17 = vsub.f32 1.0, %v223_v16 }
 0x135   : > { %v225_v19 = vmul.f32 %v393_v15, %v224_v17 }
 0x137   : > { %v226_v21 = vadd.f32 %v393_v15, %v225_v19 }
 0x139   : > { %v230_v24 = vsel %vm229_vm2, %v393_v15, %v226_v21 }
 0x13a   : > { %v235_v25 = vsel %vm232_vm3, %v234_v22, %v230_v24 }
 0x13b   : > { %v237_v26 = vmul.f32 %v235_v25, %v213_v23  ;;  %v236_v29 = vmul.f32 %v235_v25, %v221_v28 }
 0x13d   : > { %394 = vlog2.f32 %v237_v26 }
 0x143   : > { %v395_v27 = vpop.eup %394 }
 0x144   : > { %v239_v30 = vmul.f32 0.6931472, %v395_v27 }
 0x146   : > { %v240_v31 = vadd.f32 %v239_v30, %v236_v29 }
 0x148   : > { %242 = vst.msk [vmem:[%s199_s16] sm:$0xff] %vm241_vm4, %v240_v31 }
 0x149 PF: > { %p15_p8 = scmp.ge.s32.totalorder %s533_s14, 6   ;;  %s644_s9 = smov %s486_s10 }
 0x14a   : > { %s645_s10 = smov %s490_s11  ;;  %s646_s11 = smov %s543_s17 }
 0x14b   : > { %s647_s12 = smov %s533_s14  ;;  %17 = sbr.rel (!%p15_p8) target bundleno = 5 (0x5), region = 81 }
 0x150   :  { %262 = vsyncpa [#allocation3], 1 }
 0x151   :  { %264 = vsyncpa [#allocation3 + $0x1], 1 }
 0x152   :  { %265 = vsyncpa [#allocation5], 1 }
 0x153   :  { %267 = vsyncpa [#allocation5 + $0x1], 1 }

</bundles_post_ra>
